<compile_context>
chip_gen: v6e
topology: v6e:2x2x1
jax: 0.10.0
libtpu: 0.0.40
codegen_flags: <defaults>
</compile_context>

<pallas_src>
import jax
import jax.numpy as jnp
from jax.experimental import pallas as pl
from jax.experimental.pallas import tpu as pltpu

NUM_STATES = 500   # nn.Embedding(500, 4)
EMB_DIM = 4
HIDDEN = 50
OUTPUTS = 6        # Taxi-v3 has 6 actions

LANES = 128
PAD_STATES = 512   # NUM_STATES rounded up to a multiple of 128 (one-hot width)
PAD_HIDDEN = 128   # HIDDEN rounded up to 128 lanes
ONEHOT_CHUNKS = PAD_STATES // LANES   # 4

# Packed parameter buffer row layout (all section starts are multiples of 8).
# Biases are folded in, so there is no bias section anymore.
W1_OFF = 0                        # rows [0,512):   emb@W1 + b1, col 50 == 1 (carrier)
W2_OFF = W1_OFF + PAD_STATES      # rows [512,640): W2 (50x50), row 50 = [b2 | 1]
W3_OFF = W2_OFF + PAD_HIDDEN      # rows [640,768): W3 (50x6),  row 50 = b3
PACK_ROWS = W3_OFF + PAD_HIDDEN   # 768 rows x 128 lanes x 4 B = 384 KiB

PARAM_DTYPE = jnp.float32         # bf16 possible; needs looser test tolerance
MAX_TILE_B = 2048                 # per-tile VMEM (chunked one-hot) stays well < 16 MiB
SMALL_SINGLE_TILE_B = 128         # below this: single grid step (no split overhead)
NARROW_OUT_MIN_ROWS = 65536       # very large B: shrink output writeback 16x
OUT_NARROW = 8                    # narrow output width (== full array last dim)


def _round_up(x, m):
    return ((x + m - 1) // m) * m


def _cdiv(a, b):
    return -(-a // b)


def dqn_kernel(idx_ref, p_ref, out_ref):
    idx = idx_ref[...]                                      # (TILE_B, 1) int32
    tb = idx_ref.shape[0]
    cdt = p_ref.dtype                                       # f32 (or bf16 if enabled)

    # Embedding + l1 (+ b1) fused: chunked one-hot @ folded-weight partial dots.
    acc = jnp.zeros((tb, LANES), jnp.float32)
    for c in range(ONEHOT_CHUNKS):                          # statically unrolled (4)
        lane_ids = jax.lax.broadcasted_iota(jnp.int32, (tb, LANES), 1) + c * LANES
        onehot = (lane_ids == idx).astype(cdt)              # (TILE_B, 128), exact 0/1
        w1c = p_ref[W1_OFF + c * LANES: W1_OFF + (c + 1) * LANES, :]
        acc = acc + jnp.dot(onehot, w1c, preferred_element_type=jnp.float32)
    # Lane 50 of acc is the constant-1 bias carrier (survives ReLU); lanes 51..127 = 0.
    h1 = jnp.maximum(acc, 0.0).astype(cdt)

    # l2 (+ b2 via carrier row), then l3 (+ b3 via carrier row) — lane-dense MXU.
    w2 = p_ref[W2_OFF:W2_OFF + PAD_HIDDEN, :]
    h2 = jnp.maximum(jnp.dot(h1, w2, preferred_element_type=jnp.float32), 0.0).astype(cdt)

    w3 = p_ref[W3_OFF:W3_OFF + PAD_HIDDEN, :]
    res = jnp.dot(h2, w3, preferred_element_type=jnp.float32)   # (TILE_B, 128)
    out_ref[...] = res[:, :out_ref.shape[-1]]               # 128-wide or narrow (8)


def pack_params(params, dtype=PARAM_DTYPE):
    """Fold emb into l1, fold all biases (affine augmentation), pack & pad."""
    emb, w1, b1, w2, b2, w3, b3 = params
    w1f = jnp.dot(emb, w1) + b1.reshape(1, -1)               # (500, 50): emb@W1 + b1
    packed = jnp.zeros((PACK_ROWS, LANES), jnp.float32)
    packed = packed.at[W1_OFF:W1_OFF + NUM_STATES, :HIDDEN].set(w1f)
    packed = packed.at[W1_OFF:W1_OFF + NUM_STATES, HIDDEN].set(1.0)   # constant carrier
    packed = packed.at[W2_OFF:W2_OFF + HIDDEN, :HIDDEN].set(w2)
    packed = packed.at[W2_OFF + HIDDEN, :HIDDEN].set(b2.reshape(-1))  # b2 row
    packed = packed.at[W2_OFF + HIDDEN, HIDDEN].set(1.0)              # propagate carrier
    packed = packed.at[W3_OFF:W3_OFF + HIDDEN, :OUTPUTS].set(w3)
    packed = packed.at[W3_OFF + HIDDEN, :OUTPUTS].set(b3.reshape(-1)) # b3 row
    return packed.astype(dtype)


def dqn_forward(x_idx, packed, out_lanes=None):
    """x_idx: (B,) int32 state indices in [0, 500). Returns (B, OUTPUTS) f32."""
    B = x_idx.shape[0]

    # Tile selection: single tile for small B; otherwise >=2 parallel tiles
    # (megacore on v7x), capped at MAX_TILE_B, fit to B to minimize pad waste.
    b8 = _round_up(max(B, 1), 8)
    if b8 <= SMALL_SINGLE_TILE_B:
        n_tiles, tile_b = 1, b8
    else:
        n_tiles = max(2, _cdiv(b8, MAX_TILE_B))
        tile_b = _round_up(_cdiv(b8, n_tiles), 8)
    b_pad = n_tiles * tile_b

    # Output width: lane-dense 128 by default; narrow (8) only for very large
    # batches where HBM writeback bytes dominate (biggest win on v5e/v6e).
    if out_lanes is None:
        out_lanes = OUT_NARROW if b_pad >= NARROW_OUT_MIN_ROWS else LANES

    idx = jnp.zeros((b_pad, 1), jnp.int32).at[:B, 0].set(x_idx.astype(jnp.int32))

    # Advisory cost reflecting the padded work the kernel actually performs.
    itemsize = jnp.dtype(packed.dtype).itemsize
    flops = 2 * b_pad * LANES * (PAD_STATES + 2 * PAD_HIDDEN)
    bytes_accessed = (PACK_ROWS * LANES * itemsize   # params, resident in VMEM
                      + b_pad * 4                    # indices
                      + b_pad * out_lanes * 4)       # output writeback
    cost = pl.CostEstimate(flops=flops, transcendentals=0,
                           bytes_accessed=bytes_accessed)

    out_pad = pl.pallas_call(
        dqn_kernel,
        out_shape=jax.ShapeDtypeStruct((b_pad, out_lanes), jnp.float32),
        grid_spec=pl.GridSpec(
            grid=(n_tiles,),
            in_specs=[
                pl.BlockSpec((tile_b, 1), lambda i: (i, 0)),         # indices (tiled)
                pl.BlockSpec(memory_space=pltpu.MemorySpace.VMEM),   # params (whole,
                                                                     #  single-buffered)
            ],
            out_specs=pl.BlockSpec((tile_b, out_lanes), lambda i: (i, 0)),
        ),
        compiler_params=pltpu.CompilerParams(
            dimension_semantics=("parallel",)),
        cost_estimate=cost,
    )(idx, packed)

    return out_pad[:B, :OUTPUTS]


def init_params(key):
    """Deterministic synthetic parameters (shapes match the PyTorch module)."""
    ks = jax.random.split(key, 7)
    emb = jax.random.normal(ks[0], (NUM_STATES, EMB_DIM), jnp.float32)
    # Linear weights stored as (in, out) == PyTorch weight.T
    w1 = jax.random.normal(ks[1], (EMB_DIM, HIDDEN), jnp.float32) * 0.1
    b1 = jax.random.normal(ks[2], (1, HIDDEN), jnp.float32) * 0.1
    w2 = jax.random.normal(ks[3], (HIDDEN, HIDDEN), jnp.float32) * 0.1
    b2 = jax.random.normal(ks[4], (1, HIDDEN), jnp.float32) * 0.1
    w3 = jax.random.normal(ks[5], (HIDDEN, OUTPUTS), jnp.float32) * 0.1
    b3 = jax.random.normal(ks[6], (1, OUTPUTS), jnp.float32) * 0.1
    return emb, w1, b1, w2, b2, w3, b3


def dqn_ref(x_idx, params):
    """Pure-JAX reference mirroring the PyTorch forward."""
    emb, w1, b1, w2, b2, w3, b3 = params
    x = emb[x_idx]                                        # (B, 4)
    x = jnp.maximum(x @ w1 + b1, 0.0)
    x = jnp.maximum(x @ w2 + b2, 0.0)
    return x @ w3 + b3


if __name__ == "__main__":
    key = jax.random.PRNGKey(0)
    pkey, k1, k2, k3 = jax.random.split(key, 4)
    params = init_params(pkey)
    packed = pack_params(params)          # fold + pack once (refold on weight update)

    cases = [
        ("small_single_tile", k1, 8, None),        # gridless path, 128-wide output
        ("gridded_two_tiles", k2, 300, None),      # forced 2-way parallel split
        ("narrow_output", k3, 40, OUT_NARROW),     # exercise the narrow writeback path
    ]
    for name, xkey, B, out_lanes in cases:
        x = jax.random.randint(xkey, (B,), 0, NUM_STATES, dtype=jnp.int32)
        out = jax.block_until_ready(dqn_forward(x, packed, out_lanes=out_lanes))
        ref = dqn_ref(x, params)
        assert out.shape == (B, OUTPUTS), f"bad shape for {name}: {out.shape}"
        assert jnp.allclose(out, ref, atol=1e-4, rtol=1e-4), f"mismatch vs ref: {name}"

    print("KERNEL_OK")
</pallas_src>

<mosaic_0001>
module attributes {stable_mosaic.version = 11 : i64} {
  func.func @dqn_kernel(%arg0: i32, %arg1: memref<8x1xi32, #tpu.memory_space<vmem>>, %arg2: memref<768x128xf32, #tpu.memory_space<vmem>>, %arg3: memref<8x128xf32, #tpu.memory_space<vmem>>) attributes {dimension_semantics = [#tpu.dimension_semantics<parallel>], iteration_bounds = array<i64: 1>, scalar_prefetch = 0 : i64, scratch_operands = 0 : i64, tpu.core_type = #tpu.core_type<tc>, window_params = [{transform_indices = @transform_0, window_bounds = array<i64: 8, 1>}, {pipeline_mode = #tpu.pipeline_mode<synchronous>, transform_indices = @transform_1, window_bounds = array<i64: 768, 128>}, {transform_indices = @transform_2, window_bounds = array<i64: 8, 128>}]} {
    %c0 = arith.constant 0 : index
    %c0_0 = arith.constant 0 : index
    %0 = vector.load %arg1[%c0, %c0_0] : memref<8x1xi32, #tpu.memory_space<vmem>>, vector<8x1xi32>
    %cst = arith.constant 0.000000e+00 : f32
    %1 = vector.broadcast %cst : f32 to vector<8x128xf32>
    %2 = tpu.iota {dimensions = array<i32: 1>} : vector<8x128xi32>
    %c0_i32 = arith.constant 0 : i32
    %3 = vector.broadcast %c0_i32 : i32 to vector<8x128xi32>
    %4 = arith.addi %2, %3 : vector<8x128xi32>
    %5 = vector.broadcast %0 : vector<8x1xi32> to vector<8x128xi32>
    %6 = arith.cmpi eq, %4, %5 : vector<8x128xi32>
    %7 = arith.extui %6 : vector<8x128xi1> to vector<8x128xi32>
    %8 = arith.sitofp %7 : vector<8x128xi32> to vector<8x128xf32>
    %c0_1 = arith.constant 0 : index
    %c0_2 = arith.constant 0 : index
    %9 = vector.load %arg2[%c0_1, %c0_2] : memref<768x128xf32, #tpu.memory_space<vmem>>, vector<128x128xf32>
    %cst_3 = arith.constant dense<0.000000e+00> : vector<8x128xf32>
    %10 = tpu.matmul %8, %9, %cst_3 {dimension_numbers = #tpu.dot_dimension_numbers<[1], [0], [0], [1], [0, 0, 1, 1], [], []>} : vector<8x128xf32>, vector<128x128xf32>, vector<8x128xf32> -> vector<8x128xf32>
    %11 = arith.addf %1, %10 : vector<8x128xf32>
    %12 = tpu.iota {dimensions = array<i32: 1>} : vector<8x128xi32>
    %c128_i32 = arith.constant 128 : i32
    %13 = vector.broadcast %c128_i32 : i32 to vector<8x128xi32>
    %14 = arith.addi %12, %13 : vector<8x128xi32>
    %15 = vector.broadcast %0 : vector<8x1xi32> to vector<8x128xi32>
    %16 = arith.cmpi eq, %14, %15 : vector<8x128xi32>
    %17 = arith.extui %16 : vector<8x128xi1> to vector<8x128xi32>
    %18 = arith.sitofp %17 : vector<8x128xi32> to vector<8x128xf32>
    %c128 = arith.constant 128 : index
    %c0_4 = arith.constant 0 : index
    %19 = vector.load %arg2[%c128, %c0_4] : memref<768x128xf32, #tpu.memory_space<vmem>>, vector<128x128xf32>
    %cst_5 = arith.constant dense<0.000000e+00> : vector<8x128xf32>
    %20 = tpu.matmul %18, %19, %cst_5 {dimension_numbers = #tpu.dot_dimension_numbers<[1], [0], [0], [1], [0, 0, 1, 1], [], []>} : vector<8x128xf32>, vector<128x128xf32>, vector<8x128xf32> -> vector<8x128xf32>
    %21 = arith.addf %11, %20 : vector<8x128xf32>
    %22 = tpu.iota {dimensions = array<i32: 1>} : vector<8x128xi32>
    %c256_i32 = arith.constant 256 : i32
    %23 = vector.broadcast %c256_i32 : i32 to vector<8x128xi32>
    %24 = arith.addi %22, %23 : vector<8x128xi32>
    %25 = vector.broadcast %0 : vector<8x1xi32> to vector<8x128xi32>
    %26 = arith.cmpi eq, %24, %25 : vector<8x128xi32>
    %27 = arith.extui %26 : vector<8x128xi1> to vector<8x128xi32>
    %28 = arith.sitofp %27 : vector<8x128xi32> to vector<8x128xf32>
    %c256 = arith.constant 256 : index
    %c0_6 = arith.constant 0 : index
    %29 = vector.load %arg2[%c256, %c0_6] : memref<768x128xf32, #tpu.memory_space<vmem>>, vector<128x128xf32>
    %cst_7 = arith.constant dense<0.000000e+00> : vector<8x128xf32>
    %30 = tpu.matmul %28, %29, %cst_7 {dimension_numbers = #tpu.dot_dimension_numbers<[1], [0], [0], [1], [0, 0, 1, 1], [], []>} : vector<8x128xf32>, vector<128x128xf32>, vector<8x128xf32> -> vector<8x128xf32>
    %31 = arith.addf %21, %30 : vector<8x128xf32>
    %32 = tpu.iota {dimensions = array<i32: 1>} : vector<8x128xi32>
    %c384_i32 = arith.constant 384 : i32
    %33 = vector.broadcast %c384_i32 : i32 to vector<8x128xi32>
    %34 = arith.addi %32, %33 : vector<8x128xi32>
    %35 = vector.broadcast %0 : vector<8x1xi32> to vector<8x128xi32>
    %36 = arith.cmpi eq, %34, %35 : vector<8x128xi32>
    %37 = arith.extui %36 : vector<8x128xi1> to vector<8x128xi32>
    %38 = arith.sitofp %37 : vector<8x128xi32> to vector<8x128xf32>
    %c384 = arith.constant 384 : index
    %c0_8 = arith.constant 0 : index
    %39 = vector.load %arg2[%c384, %c0_8] : memref<768x128xf32, #tpu.memory_space<vmem>>, vector<128x128xf32>
    %cst_9 = arith.constant dense<0.000000e+00> : vector<8x128xf32>
    %40 = tpu.matmul %38, %39, %cst_9 {dimension_numbers = #tpu.dot_dimension_numbers<[1], [0], [0], [1], [0, 0, 1, 1], [], []>} : vector<8x128xf32>, vector<128x128xf32>, vector<8x128xf32> -> vector<8x128xf32>
    %41 = arith.addf %31, %40 : vector<8x128xf32>
    %cst_10 = arith.constant 0.000000e+00 : f32
    %42 = vector.broadcast %cst_10 : f32 to vector<8x128xf32>
    %43 = arith.maximumf %41, %42 : vector<8x128xf32>
    %c512 = arith.constant 512 : index
    %c0_11 = arith.constant 0 : index
    %44 = vector.load %arg2[%c512, %c0_11] : memref<768x128xf32, #tpu.memory_space<vmem>>, vector<128x128xf32>
    %cst_12 = arith.constant dense<0.000000e+00> : vector<8x128xf32>
    %45 = tpu.matmul %43, %44, %cst_12 {dimension_numbers = #tpu.dot_dimension_numbers<[1], [0], [0], [1], [0, 0, 1, 1], [], []>} : vector<8x128xf32>, vector<128x128xf32>, vector<8x128xf32> -> vector<8x128xf32>
    %cst_13 = arith.constant 0.000000e+00 : f32
    %46 = vector.broadcast %cst_13 : f32 to vector<8x128xf32>
    %47 = arith.maximumf %45, %46 : vector<8x128xf32>
    %c640 = arith.constant 640 : index
    %c0_14 = arith.constant 0 : index
    %48 = vector.load %arg2[%c640, %c0_14] : memref<768x128xf32, #tpu.memory_space<vmem>>, vector<128x128xf32>
    %cst_15 = arith.constant dense<0.000000e+00> : vector<8x128xf32>
    %49 = tpu.matmul %47, %48, %cst_15 {dimension_numbers = #tpu.dot_dimension_numbers<[1], [0], [0], [1], [0, 0, 1, 1], [], []>} : vector<8x128xf32>, vector<128x128xf32>, vector<8x128xf32> -> vector<8x128xf32>
    %c0_16 = arith.constant 0 : index
    %c0_17 = arith.constant 0 : index
    %50 = vector.load %arg3[%c0_16, %c0_17] : memref<8x128xf32, #tpu.memory_space<vmem>>, vector<8x128xf32>
    tpu.vector_store %arg3[%c0_16, %c0_17], %49 {strides = array<i32>} : memref<8x128xf32, #tpu.memory_space<vmem>>, vector<8x128xf32>,
    return
  }
  func.func @transform_0(%arg0: i32) -> (i32, i32) {
    %c0_i32 = arith.constant 0 : i32
    %c0_i32_0 = arith.constant 0 : i32
    return %arg0, %c0_i32 : i32, i32
  }
  func.func @transform_1(%arg0: i32) -> (i32, i32) {
    %c0_i32 = arith.constant 0 : i32
    %c0_i32_0 = arith.constant 0 : i32
    %c0_i32_1 = arith.constant 0 : i32
    return %c0_i32, %c0_i32_0 : i32, i32
  }
  func.func @transform_2(%arg0: i32) -> (i32, i32) {
    %c0_i32 = arith.constant 0 : i32
    %c0_i32_0 = arith.constant 0 : i32
    return %arg0, %c0_i32 : i32, i32
  }
}

</mosaic_0001>

<bundles_post_ra>
// kernel: tpu_custom_call.1
= control target key start
LH: loop header
LB: loop body
LE: loop exit
PB: predicated region body
PF: predicated region fallthrough
CT: control target
= control target key end

     0   :  { %7 = vsyncpa [#allocation3], 0  ;;  %s1112_s0 = inlined_call_operand.vmem [shape: s32[8,1], index: 0, kind: input, shape index: {}]   ;;  %s1113_s1 = inlined_call_operand.hbm [shape: f32[768,128], index: 1, kind: input, shape index: {}]   ;;  %s1114_s2 = inlined_call_operand.hbm [shape: f32[8,128], index: 2, kind: output, shape index: {}]  }
   0x1   :  { %8 = vsyncpa [#allocation4], 0  ;;  %s956_s9 = smov [#allocation2]  }
   0x2   :  { %s16_s10 = sshll.u32 %s956_s9, 4  ;;  %s17_s10 = int_to_ptr.vmem [resolvable:$true] %s16_s10 }
   0x3   :  { %s920_s11 = scalar_lea.vmem %s17_s10, 12288  ;;  %p925_p1 = scmp.lt.s32.totalorder %s17_s10, %s17_s10 }
   0x4   :  { %p921_p0 = scmp.ne.s32.totalorder %s17_s10, %s920_s11  ;;  %p926_p2 = scmp.lt.s32.totalorder %s920_s11, %s920_s11 }
   0x6   :  { %p927_p3 = por %p926_p2, %p925_p1 }
   0x8   :  { %p928_p4 = pnand %p927_p3, %p921_p0 }
   0xa   :  { %931 = shalt.err (!%p928_p4)
}
   0xb   :  { %s957_s12 = smov 128   ;;  %s958_s13 = smov 8  }
   0xc   :  { %22 = dma.hbm_to_vmem [thread:$0]  %s1113_s1, 12288, %s17_s10, [#allocation3], %s957_s12, %s957_s12, %s958_s13  }
   0xd   :  { %952 = dma.done.wait [#allocation3], 12288  }
   0xe   :  { %953 = vsyncadd [#allocation3], 4294955008  ;;  %v959_v0 = vmov 0   ;;  %v960_v1 = vmov 0.0   ;;  %vm961_vm0 = vmmov 0   ;;  %v26_v2 = vld [vmem:[%s1112_s0] sm:$0xff]  ;;  %v27_v35 = vlaneseq }
   0xf   :  { %911 = vset.pattern.permute.xlu0 %v959_v0  ;;  %693 = vmatprep.subr.mxu0 %v960_v1  ;;  %v70_v3 = vld [vmem:[#allocation2 + $0xf8] sm:$0xff]  ;;  %v69_v5 = vld [vmem:[#allocation2 + $0xf0] sm:$0xff]  ;;  %v68_v7 = vld [vmem:[#allocation2 + $0xe8] sm:$0xff]  ;;  %v962_v41 = vmov 1.0   ;;  %s963_s0 = smov [#allocation5]  }
  0x10   :  { %728 = vmatprep.subr.mxu1 %v960_v1  ;;  %725 = vmatprep.mubr.msk.f32.mxu0 %vm961_vm0, %v960_v1  ;;  %v50_v4 = vld [vmem:[#allocation2 + $0x78] sm:$0xff]  ;;  %v49_v6 = vld [vmem:[#allocation2 + $0x70] sm:$0xff]  ;;  %v48_v8 = vld [vmem:[#allocation2 + $0x68] sm:$0xff]  ;;  %v1023_v36 = vand.u32 127, %v27_v35  ;;  %s574_s1 = sshll.u32 %s963_s0, 4  ;;  %s575_s1 = int_to_ptr.vmem [resolvable:$true] %s574_s1 }
  0x11   :  { %760 = vmatprep.mubr.msk.f32.mxu1 %vm961_vm0, %v960_v1  ;;  %30 = vperm.xlu0 %911, %v26_v2   ;;  %v67_v9 = vld [vmem:[#allocation2 + $0xe0] sm:$0xff]  ;;  %v66_v11 = vld [vmem:[#allocation2 + $0xd8] sm:$0xff]  ;;  %v65_v13 = vld [vmem:[#allocation2 + $0xd0] sm:$0xff]  ;;  %s932_s18 = scalar_lea.vmem %s575_s1, 128  ;;  %p937_p6 = scmp.lt.s32.totalorder %s575_s1, %s575_s1 }
  0x12   :  { %694 = vmatpush3.msra.mxu0 %v70_v3  ;;  %729 = vmatpush3.msra.mxu1 %v50_v4  ;;  %v47_v10 = vld [vmem:[#allocation2 + $0x60] sm:$0xff]  ;;  %v46_v12 = vld [vmem:[#allocation2 + $0x58] sm:$0xff]  ;;  %v45_v14 = vld [vmem:[#allocation2 + $0x50] sm:$0xff]  ;;  %v51_v37 = vadd.s32 128, %v1023_v36  ;;  %p933_p5 = scmp.ne.s32.totalorder %s575_s1, %s932_s18  ;;  %p938_p7 = scmp.lt.s32.totalorder %s932_s18, %s932_s18 }
  0x13   :  { %695 = vmatprep.subr.mxu0 %v960_v1  ;;  %730 = vmatprep.subr.mxu1 %v960_v1  ;;  %v64_v15 = vld [vmem:[#allocation2 + $0xc8] sm:$0xff]  ;;  %v63_v17 = vld [vmem:[#allocation2 + $0xc0] sm:$0xff]  ;;  %v62_v19 = vld [vmem:[#allocation2 + $0xb8] sm:$0xff] }
  0x14   :  { %696 = vmatpush3.msra.mxu0 %v69_v5  ;;  %731 = vmatpush3.msra.mxu1 %v49_v6  ;;  %v44_v16 = vld [vmem:[#allocation2 + $0x48] sm:$0xff]  ;;  %v43_v18 = vld [vmem:[#allocation2 + $0x40] sm:$0xff]  ;;  %v42_v20 = vld [vmem:[#allocation2 + $0x38] sm:$0xff]  ;;  %p939_p8 = por %p938_p7, %p937_p6 }
  0x15   :  { %697 = vmatprep.subr.mxu0 %v960_v1  ;;  %732 = vmatprep.subr.mxu1 %v960_v1  ;;  %v61_v21 = vld [vmem:[#allocation2 + $0xb0] sm:$0xff]  ;;  %v60_v23 = vld [vmem:[#allocation2 + $0xa8] sm:$0xff]  ;;  %v59_v25 = vld [vmem:[#allocation2 + $0xa0] sm:$0xff] }
  0x16   :  { %698 = vmatpush3.msra.mxu0 %v68_v7  ;;  %733 = vmatpush3.msra.mxu1 %v48_v8  ;;  %v41_v22 = vld [vmem:[#allocation2 + $0x30] sm:$0xff]  ;;  %v40_v24 = vld [vmem:[#allocation2 + $0x28] sm:$0xff]  ;;  %v39_v26 = vld [vmem:[#allocation2 + $0x20] sm:$0xff]  ;;  %v211_v7 = vadd.s32 256, %v1023_v36  ;;  %v302_v8 = vadd.s32 384, %v1023_v36  ;;  %p940_p9 = pnand %p939_p8, %p933_p5 }
  0x17   :  { %699 = vmatprep.subr.mxu0 %v960_v1  ;;  %734 = vmatprep.subr.mxu1 %v960_v1  ;;  %v58_v27 = vld [vmem:[#allocation2 + $0x98] sm:$0xff]  ;;  %v57_v29 = vld [vmem:[#allocation2 + $0x90] sm:$0xff]  ;;  %v56_v31 = vld [vmem:[#allocation2 + $0x88] sm:$0xff] }
  0x18   :  { %700 = vmatpush3.msra.mxu0 %v67_v9  ;;  %735 = vmatpush3.msra.mxu1 %v47_v10  ;;  %v38_v28 = vld [vmem:[#allocation2 + $0x18] sm:$0xff]  ;;  %v37_v30 = vld [vmem:[#allocation2 + $0x10] sm:$0xff]  ;;  %v36_v32 = vld [vmem:[#allocation2 + $0x8] sm:$0xff] }
  0x19   :  { %701 = vmatprep.subr.mxu0 %v960_v1  ;;  %736 = vmatprep.subr.mxu1 %v960_v1  ;;  %v55_v33 = vld [vmem:[#allocation2 + $0x80] sm:$0xff]  ;;  %v230_v39 = vld [vmem:[#allocation2 + $0x178] sm:$0xff]  ;;  %v229_v42 = vld [vmem:[#allocation2 + $0x170] sm:$0xff] }
  0x1a   :  { %702 = vmatpush3.msra.mxu0 %v66_v11  ;;  %737 = vmatpush3.msra.mxu1 %v46_v12  ;;  %v35_v34 = vld [vmem:[#allocation2] sm:$0xff]  ;;  %v321_v40 = vld [vmem:[#allocation2 + $0x1f8] sm:$0xff]  ;;  %v320_v43 = vld [vmem:[#allocation2 + $0x1f0] sm:$0xff] }
  0x1b   :  { %703 = vmatprep.subr.mxu0 %v960_v1  ;;  %738 = vmatprep.subr.mxu1 %v960_v1  ;;  %v228_v44 = vld [vmem:[#allocation2 + $0x168] sm:$0xff]  ;;  %v227_v46 = vld [vmem:[#allocation2 + $0x160] sm:$0xff]  ;;  %v226_v48 = vld [vmem:[#allocation2 + $0x158] sm:$0xff] }
  0x1c   :  { %704 = vmatpush3.msra.mxu0 %v65_v13  ;;  %739 = vmatpush3.msra.mxu1 %v45_v14  ;;  %v319_v45 = vld [vmem:[#allocation2 + $0x1e8] sm:$0xff]  ;;  %v318_v47 = vld [vmem:[#allocation2 + $0x1e0] sm:$0xff]  ;;  %v317_v49 = vld [vmem:[#allocation2 + $0x1d8] sm:$0xff] }
  0x1d   :  { %705 = vmatprep.subr.mxu0 %v960_v1  ;;  %740 = vmatprep.subr.mxu1 %v960_v1  ;;  %v225_v50 = vld [vmem:[#allocation2 + $0x150] sm:$0xff]  ;;  %v224_v52 = vld [vmem:[#allocation2 + $0x148] sm:$0xff]  ;;  %v223_v54 = vld [vmem:[#allocation2 + $0x140] sm:$0xff] }
  0x1e   :  { %706 = vmatpush3.msra.mxu0 %v64_v15  ;;  %741 = vmatpush3.msra.mxu1 %v44_v16  ;;  %v316_v51 = vld [vmem:[#allocation2 + $0x1d0] sm:$0xff]  ;;  %v315_v53 = vld [vmem:[#allocation2 + $0x1c8] sm:$0xff]  ;;  %v314_v55 = vld [vmem:[#allocation2 + $0x1c0] sm:$0xff] }
  0x1f   :  { %707 = vmatprep.subr.mxu0 %v960_v1  ;;  %742 = vmatprep.subr.mxu1 %v960_v1  ;;  %v222_v56 = vld [vmem:[#allocation2 + $0x138] sm:$0xff]  ;;  %v221_v58 = vld [vmem:[#allocation2 + $0x130] sm:$0xff]  ;;  %v220_v60 = vld [vmem:[#allocation2 + $0x128] sm:$0xff] }
  0x20   :  { %708 = vmatpush3.msra.mxu0 %v63_v17  ;;  %743 = vmatpush3.msra.mxu1 %v43_v18  ;;  %v313_v57 = vld [vmem:[#allocation2 + $0x1b8] sm:$0xff]  ;;  %v312_v59 = vld [vmem:[#allocation2 + $0x1b0] sm:$0xff]  ;;  %v311_v61 = vld [vmem:[#allocation2 + $0x1a8] sm:$0xff] }
  0x21   :  { %709 = vmatprep.subr.mxu0 %v960_v1  ;;  %744 = vmatprep.subr.mxu1 %v960_v1  ;;  %v219_v62 = vld [vmem:[#allocation2 + $0x120] sm:$0xff]  ;;  %v218_v0 = vld [vmem:[#allocation2 + $0x118] sm:$0xff]  ;;  %v217_v3 = vld [vmem:[#allocation2 + $0x110] sm:$0xff] }
  0x22   :  { %710 = vmatpush3.msra.mxu0 %v62_v19  ;;  %745 = vmatpush3.msra.mxu1 %v42_v20  ;;  %v310_v63 = vld [vmem:[#allocation2 + $0x1a0] sm:$0xff]  ;;  %v309_v2 = vld [vmem:[#allocation2 + $0x198] sm:$0xff]  ;;  %v308_v4 = vld [vmem:[#allocation2 + $0x190] sm:$0xff] }
  0x23   :  { %711 = vmatprep.subr.mxu0 %v960_v1  ;;  %746 = vmatprep.subr.mxu1 %v960_v1  ;;  %v216_v5 = vld [vmem:[#allocation2 + $0x108] sm:$0xff]  ;;  %v215_v9 = vld [vmem:[#allocation2 + $0x100] sm:$0xff]  ;;  %v409_v11 = vld [vmem:[#allocation2 + $0x278] sm:$0xff] }
  0x24   :  { %712 = vmatpush3.msra.mxu0 %v61_v21  ;;  %747 = vmatpush3.msra.mxu1 %v41_v22  ;;  %v307_v6 = vld [vmem:[#allocation2 + $0x188] sm:$0xff]  ;;  %v306_v10 = vld [vmem:[#allocation2 + $0x180] sm:$0xff]  ;;  %v408_v12 = vld [vmem:[#allocation2 + $0x270] sm:$0xff] }
  0x25   :  { %713 = vmatprep.subr.mxu0 %v960_v1  ;;  %748 = vmatprep.subr.mxu1 %v960_v1  ;;  %v407_v13 = vld [vmem:[#allocation2 + $0x268] sm:$0xff]  ;;  %v406_v14 = vld [vmem:[#allocation2 + $0x260] sm:$0xff]  ;;  %v405_v15 = vld [vmem:[#allocation2 + $0x258] sm:$0xff] }
  0x26   :  { %714 = vmatpush3.msra.mxu0 %v60_v23  ;;  %749 = vmatpush3.msra.mxu1 %v40_v24  ;;  %v404_v16 = vld [vmem:[#allocation2 + $0x250] sm:$0xff]  ;;  %v403_v17 = vld [vmem:[#allocation2 + $0x248] sm:$0xff]  ;;  %v402_v18 = vld [vmem:[#allocation2 + $0x240] sm:$0xff] }
  0x27   :  { %715 = vmatprep.subr.mxu0 %v960_v1  ;;  %750 = vmatprep.subr.mxu1 %v960_v1  ;;  %v401_v19 = vld [vmem:[#allocation2 + $0x238] sm:$0xff]  ;;  %v400_v20 = vld [vmem:[#allocation2 + $0x230] sm:$0xff]  ;;  %v399_v21 = vld [vmem:[#allocation2 + $0x228] sm:$0xff] }
  0x28   :  { %716 = vmatpush3.msra.mxu0 %v59_v25  ;;  %751 = vmatpush3.msra.mxu1 %v39_v26  ;;  %v398_v22 = vld [vmem:[#allocation2 + $0x220] sm:$0xff]  ;;  %v397_v23 = vld [vmem:[#allocation2 + $0x218] sm:$0xff]  ;;  %v396_v24 = vld [vmem:[#allocation2 + $0x210] sm:$0xff] }
  0x29   :  { %717 = vmatprep.subr.mxu0 %v960_v1  ;;  %752 = vmatprep.subr.mxu1 %v960_v1  ;;  %v395_v25 = vld [vmem:[#allocation2 + $0x208] sm:$0xff]  ;;  %v394_v26 = vld [vmem:[#allocation2 + $0x200] sm:$0xff]  ;;  %v488_v35 = vld [vmem:[#allocation2 + $0x2b8] sm:$0xff] }
  0x2a   :  { %718 = vmatpush3.msra.mxu0 %v58_v27  ;;  %753 = vmatpush3.msra.mxu1 %v38_v28  ;;  %v496_v27 = vld [vmem:[#allocation2 + $0x2f8] sm:$0xff]  ;;  %v495_v28 = vld [vmem:[#allocation2 + $0x2f0] sm:$0xff] }
  0x2b   :  { %719 = vmatprep.subr.mxu0 %v960_v1  ;;  %754 = vmatprep.subr.mxu1 %v960_v1 }
  0x2c   :  { %720 = vmatpush3.msra.mxu0 %v57_v29  ;;  %755 = vmatpush3.msra.mxu1 %v37_v30  ;;  %v494_v29 = vld [vmem:[#allocation2 + $0x2e8] sm:$0xff]  ;;  %v493_v30 = vld [vmem:[#allocation2 + $0x2e0] sm:$0xff] }
  0x2d   :  { %721 = vmatprep.subr.mxu0 %v960_v1  ;;  %756 = vmatprep.subr.mxu1 %v960_v1 }
  0x2e   :  { %722 = vmatpush3.msra.mxu0 %v56_v31  ;;  %757 = vmatpush3.msra.mxu1 %v36_v32  ;;  %v492_v31 = vld [vmem:[#allocation2 + $0x2d8] sm:$0xff]  ;;  %v491_v32 = vld [vmem:[#allocation2 + $0x2d0] sm:$0xff] }
  0x2f   :  { %723 = vmatprep.subr.mxu0 %v960_v1  ;;  %758 = vmatprep.subr.mxu1 %v960_v1 }
  0x30   :  { %724 = vmatpush3.msra.mxu0 %v55_v33  ;;  %759 = vmatpush3.msra.mxu1 %v35_v34  ;;  %v490_v33 = vld [vmem:[#allocation2 + $0x2c8] sm:$0xff]  ;;  %v489_v34 = vld [vmem:[#allocation2 + $0x2c0] sm:$0xff] }
  0x31   :  { %763 = vmatprep.subr.mxu0 %v960_v1  ;;  %798 = vmatprep.subr.mxu1 %v960_v1 }
  0x8c   :  { %v1026_v38 = vpop.permute.xlu0 %30 }
  0x8d   :  { %vm52_vm1 = vcmp.eq.s32.totalorder %v51_v37, %v1026_v38  ;;  %vm32_vm2 = vcmp.eq.s32.totalorder %v1023_v36, %v1026_v38  ;;  %vm212_vm3 = vcmp.eq.s32.totalorder %v211_v7, %v1026_v38  ;;  %vm303_vm4 = vcmp.eq.s32.totalorder %v302_v8, %v1026_v38  ;;  %v487_v36 = vld [vmem:[#allocation2 + $0x2b0] sm:$0xff]  ;;  %v486_v37 = vld [vmem:[#allocation2 + $0x2a8] sm:$0xff]  ;;  %v485_v38 = vld [vmem:[#allocation2 + $0x2a0] sm:$0xff] }
  0x8e   :  { %726 = vmatmul.mubr.msk.f32.vlgmr.msra.gmra.mxu0 %vm52_vm1, %v962_v41  ;;  %761 = vmatmul.mubr.msk.f32.vlgmr.msra.gmra.mxu1 %vm32_vm2, %v962_v41 }
  0x8f   :  { %764 = vmatpush3.msra.mxu0 %v230_v39  ;;  %799 = vmatpush3.msra.mxu1 %v321_v40  ;;  %v484_v39 = vld [vmem:[#allocation2 + $0x298] sm:$0xff]  ;;  %v483_v40 = vld [vmem:[#allocation2 + $0x290] sm:$0xff] }
  0x90   :  { %765 = vmatprep.subr.mxu0 %v960_v1  ;;  %800 = vmatprep.subr.mxu1 %v960_v1 }
  0x91   :  { %766 = vmatpush3.msra.mxu0 %v229_v42  ;;  %801 = vmatpush3.msra.mxu1 %v320_v43 }
  0x92   :  { %767 = vmatprep.subr.mxu0 %v960_v1  ;;  %802 = vmatprep.subr.mxu1 %v960_v1 }
  0x93   :  { %768 = vmatpush3.msra.mxu0 %v228_v44  ;;  %803 = vmatpush3.msra.mxu1 %v319_v45 }
  0x94   :  { %769 = vmatprep.subr.mxu0 %v960_v1  ;;  %804 = vmatprep.subr.mxu1 %v960_v1 }
  0x95   :  { %770 = vmatpush3.msra.mxu0 %v227_v46  ;;  %805 = vmatpush3.msra.mxu1 %v318_v47 }
  0x96   :  { %771 = vmatprep.subr.mxu0 %v960_v1  ;;  %806 = vmatprep.subr.mxu1 %v960_v1 }
  0x97   :  { %772 = vmatpush3.msra.mxu0 %v226_v48  ;;  %807 = vmatpush3.msra.mxu1 %v317_v49 }
  0x98   :  { %773 = vmatprep.subr.mxu0 %v960_v1  ;;  %808 = vmatprep.subr.mxu1 %v960_v1 }
  0x99   :  { %774 = vmatpush3.msra.mxu0 %v225_v50  ;;  %809 = vmatpush3.msra.mxu1 %v316_v51 }
  0x9a   :  { %775 = vmatprep.subr.mxu0 %v960_v1  ;;  %810 = vmatprep.subr.mxu1 %v960_v1 }
  0x9b   :  { %776 = vmatpush3.msra.mxu0 %v224_v52  ;;  %811 = vmatpush3.msra.mxu1 %v315_v53  ;;  %v482_v53 = vld [vmem:[#allocation2 + $0x288] sm:$0xff] }
  0x9c   :  { %777 = vmatprep.subr.mxu0 %v960_v1  ;;  %812 = vmatprep.subr.mxu1 %v960_v1 }
  0x9d   :  { %778 = vmatpush3.msra.mxu0 %v223_v54  ;;  %813 = vmatpush3.msra.mxu1 %v314_v55  ;;  %v481_v54 = vld [vmem:[#allocation2 + $0x280] sm:$0xff] }
  0x9e   :  { %779 = vmatprep.subr.mxu0 %v960_v1  ;;  %814 = vmatprep.subr.mxu1 %v960_v1 }
  0x9f   :  { %780 = vmatpush3.msra.mxu0 %v222_v56  ;;  %815 = vmatpush3.msra.mxu1 %v313_v57 }
  0xa0   :  { %781 = vmatprep.subr.mxu0 %v960_v1  ;;  %816 = vmatprep.subr.mxu1 %v960_v1 }
  0xa1   :  { %782 = vmatpush3.msra.mxu0 %v221_v58  ;;  %817 = vmatpush3.msra.mxu1 %v312_v59 }
  0xa2   :  { %783 = vmatprep.subr.mxu0 %v960_v1  ;;  %818 = vmatprep.subr.mxu1 %v960_v1 }
  0xa3   :  { %784 = vmatpush3.msra.mxu0 %v220_v60  ;;  %819 = vmatpush3.msra.mxu1 %v311_v61 }
  0xa4   :  { %785 = vmatprep.subr.mxu0 %v960_v1  ;;  %820 = vmatprep.subr.mxu1 %v960_v1 }
  0xa5   :  { %786 = vmatpush3.msra.mxu0 %v219_v62  ;;  %821 = vmatpush3.msra.mxu1 %v310_v63 }
  0xa6   :  { %787 = vmatprep.subr.mxu0 %v960_v1  ;;  %822 = vmatprep.subr.mxu1 %v960_v1 }
  0xa7   :  { %788 = vmatpush3.msra.mxu0 %v218_v0  ;;  %823 = vmatpush3.msra.mxu1 %v309_v2 }
  0xa8   :  { %789 = vmatprep.subr.mxu0 %v960_v1  ;;  %824 = vmatprep.subr.mxu1 %v960_v1 }
  0xa9   :  { %790 = vmatpush3.msra.mxu0 %v217_v3  ;;  %825 = vmatpush3.msra.mxu1 %v308_v4 }
  0xaa   :  { %791 = vmatprep.subr.mxu0 %v960_v1  ;;  %826 = vmatprep.subr.mxu1 %v960_v1 }
  0xab   :  { %792 = vmatpush3.msra.mxu0 %v216_v5  ;;  %827 = vmatpush3.msra.mxu1 %v307_v6 }
  0xac   :  { %793 = vmatprep.subr.mxu0 %v960_v1  ;;  %828 = vmatprep.subr.mxu1 %v960_v1 }
  0xad   :  { %794 = vmatpush3.msra.mxu0 %v215_v9  ;;  %795 = vmatprep.mubr.msk.f32.mxu0 %vm961_vm0, %v960_v1 }
  0xae   :  { %829 = vmatpush3.msra.mxu1 %v306_v10  ;;  %830 = vmatprep.mubr.msk.f32.mxu1 %vm961_vm0, %v960_v1 }
  0xaf   :  { %796 = vmatmul.mubr.msk.f32.vlgmr.msra.gmra.mxu0 %vm212_vm3, %v962_v41  ;;  %831 = vmatmul.mubr.msk.f32.vlgmr.msra.gmra.mxu1 %vm303_vm4, %v962_v41 }
  0xb0   :  { %833 = vmatprep.subr.mxu0 %v960_v1  ;;  %865 = vmatprep.mubr.msk.f32.mxu0 %vm961_vm0, %v960_v1 }
  0xb1   :  { %868 = vmatprep.subr.mxu1 %v960_v1  ;;  %900 = vmatprep.mubr.msk.f32.mxu1 %vm961_vm0, %v960_v1 }
  0xb2   :  { %834 = vmatpush3.msra.mxu0 %v409_v11  ;;  %869 = vmatpush3.msra.mxu1 %v496_v27 }
  0xb3   :  { %835 = vmatprep.subr.mxu0 %v960_v1  ;;  %870 = vmatprep.subr.mxu1 %v960_v1 }
  0xb4   :  { %836 = vmatpush3.msra.mxu0 %v408_v12  ;;  %871 = vmatpush3.msra.mxu1 %v495_v28 }
  0xb5   :  { %837 = vmatprep.subr.mxu0 %v960_v1  ;;  %872 = vmatprep.subr.mxu1 %v960_v1 }
  0xb6   :  { %838 = vmatpush3.msra.mxu0 %v407_v13  ;;  %873 = vmatpush3.msra.mxu1 %v494_v29 }
  0xb7   :  { %839 = vmatprep.subr.mxu0 %v960_v1  ;;  %874 = vmatprep.subr.mxu1 %v960_v1 }
  0xb8   :  { %840 = vmatpush3.msra.mxu0 %v406_v14  ;;  %875 = vmatpush3.msra.mxu1 %v493_v30 }
  0xb9   :  { %841 = vmatprep.subr.mxu0 %v960_v1  ;;  %876 = vmatprep.subr.mxu1 %v960_v1 }
  0xba   :  { %842 = vmatpush3.msra.mxu0 %v405_v15  ;;  %877 = vmatpush3.msra.mxu1 %v492_v31 }
  0xbb   :  { %843 = vmatprep.subr.mxu0 %v960_v1  ;;  %878 = vmatprep.subr.mxu1 %v960_v1 }
  0xbc   :  { %844 = vmatpush3.msra.mxu0 %v404_v16  ;;  %879 = vmatpush3.msra.mxu1 %v491_v32 }
  0xbd   :  { %845 = vmatprep.subr.mxu0 %v960_v1  ;;  %880 = vmatprep.subr.mxu1 %v960_v1 }
  0xbe   :  { %846 = vmatpush3.msra.mxu0 %v403_v17  ;;  %881 = vmatpush3.msra.mxu1 %v490_v33 }
  0xbf   :  { %847 = vmatprep.subr.mxu0 %v960_v1  ;;  %882 = vmatprep.subr.mxu1 %v960_v1 }
  0xc0   :  { %848 = vmatpush3.msra.mxu0 %v402_v18  ;;  %883 = vmatpush3.msra.mxu1 %v489_v34 }
  0xc1   :  { %849 = vmatprep.subr.mxu0 %v960_v1  ;;  %884 = vmatprep.subr.mxu1 %v960_v1 }
  0xc2   :  { %850 = vmatpush3.msra.mxu0 %v401_v19  ;;  %885 = vmatpush3.msra.mxu1 %v488_v35 }
  0xc3   :  { %851 = vmatprep.subr.mxu0 %v960_v1  ;;  %886 = vmatprep.subr.mxu1 %v960_v1 }
  0xc4   :  { %852 = vmatpush3.msra.mxu0 %v400_v20  ;;  %887 = vmatpush3.msra.mxu1 %v487_v36 }
  0xc5   :  { %853 = vmatprep.subr.mxu0 %v960_v1  ;;  %888 = vmatprep.subr.mxu1 %v960_v1 }
  0xc6   :  { %854 = vmatpush3.msra.mxu0 %v399_v21  ;;  %889 = vmatpush3.msra.mxu1 %v486_v37 }
  0xc7   :  { %855 = vmatprep.subr.mxu0 %v960_v1  ;;  %890 = vmatprep.subr.mxu1 %v960_v1 }
  0xc8   :  { %856 = vmatpush3.msra.mxu0 %v398_v22  ;;  %891 = vmatpush3.msra.mxu1 %v485_v38 }
  0xc9   :  { %857 = vmatprep.subr.mxu0 %v960_v1  ;;  %892 = vmatprep.subr.mxu1 %v960_v1 }
  0xca   :  { %858 = vmatpush3.msra.mxu0 %v397_v23  ;;  %893 = vmatpush3.msra.mxu1 %v484_v39 }
  0xcb   :  { %859 = vmatprep.subr.mxu0 %v960_v1  ;;  %894 = vmatprep.subr.mxu1 %v960_v1 }
  0xcc   :  { %860 = vmatpush3.msra.mxu0 %v396_v24  ;;  %895 = vmatpush3.msra.mxu1 %v483_v40 }
  0xcd   :  { %861 = vmatprep.subr.mxu0 %v960_v1  ;;  %896 = vmatprep.subr.mxu1 %v960_v1 }
  0xce   :  { %862 = vmatpush3.msra.mxu0 %v395_v25  ;;  %897 = vmatpush3.msra.mxu1 %v482_v53 }
  0xcf   :  { %863 = vmatprep.subr.mxu0 %v960_v1  ;;  %898 = vmatprep.subr.mxu1 %v960_v1 }
  0xd0   :  { %864 = vmatpush3.msra.mxu0 %v394_v26  ;;  %899 = vmatpush3.msra.mxu1 %v481_v54 }
 0x14e   :  { %v137_v41 = vpop.f32.mrf.mxu0  ;;  %v207_v42 = vpop.f32.mrf.mxu1 }
 0x14f   :  { %v208_v45 = vadd.f32 %v207_v42, %v137_v41 }
 0x150   :  { %v727_v43 = vpop.f32.mrf.mxu0  ;;  %v762_v44 = vpop.f32.mrf.mxu1 }
 0x16f   :  { %v297_v46 = vpop.f32.mrf.mxu0  ;;  %v388_v47 = vpop.f32.mrf.mxu1 }
 0x170   :  { %v301_v48 = vadd.f32 %v297_v46, %v208_v45 }
 0x171   :  { %v797_v49 = vpop.f32.mrf.mxu0  ;;  %v832_v50 = vpop.f32.mrf.mxu1 }
 0x172   :  { %v392_v51 = vadd.f32 %v388_v47, %v301_v48 }
 0x174   :  { %v393_v52 = vmax.f32 %v392_v51, 0.0 }
 0x176   :  { %866 = vmatmul.mubr.f32.vlgmr.msra.gmra.mxu0 %v393_v52 }
 0x236   :  { %v476_v55 = vpop.f32.mrf.mxu0 }
 0x237   :  { %v480_v56 = vmax.f32 %v476_v55, 0.0 }
 0x238   :  { %v867_v57 = vpop.f32.mrf.mxu0 }
 0x239   :  { %901 = vmatmul.mubr.f32.vlgmr.msra.gmra.mxu1 %v480_v56 }
 0x2f9   :  { %v563_v58 = vpop.f32.mrf.mxu1 }
 0x2fa   :  { %567 = vst [vmem:[#allocation5] sm:$0xff] %v563_v58 }
 0x2fb   :  { %v902_v59 = vpop.f32.mrf.mxu1 }
 0x2fc   :  { %943 = shalt.err (!%p940_p9)
}
 0x2fd   :  { %577 = dma.vmem_to_hbm [thread:$0]  %s575_s1, 128, %s1114_s2, [#allocation4]  }
 0x2fe   :  { %954 = dma.done.wait [#allocation4], 128  }
 0x2ff   :  { %955 = vsyncadd [#allocation4], 4294967168 }
 0x300   :  { %581 = vsyncpa [#allocation3], 1 }
 0x301   :  { %582 = vsyncpa [#allocation4], 1 }

</bundles_post_ra>
